<compile_context>
chip_gen: v5e
topology: v5e:2x2
jax: 0.10.0
libtpu: 0.0.40
codegen_flags: <defaults>
</compile_context>

<pallas_src>
import jax
import jax.numpy as jnp
from jax.experimental import pallas as pl
from jax.experimental.pallas import tpu as pltpu


def _round_up(x, m):
    return ((x + m - 1) // m) * m


def _vmem_capacity_bytes():
    """Per-core VMEM capacity; conservative 64 MiB (v7x per-TC) fallback."""
    try:
        return int(pltpu.get_tpu_info().vmem_capacity_bytes)
    except Exception:
        return 64 * 2**20


def _choose_tmid(middle, target):
    """Largest divisor of `middle` that is a multiple of 128 and <= target."""
    best = None
    d = 128
    while d <= min(middle, target):
        if middle % d == 0:
            best = d
        d += 128
    if best is not None:
        return best
    # No lane-aligned divisor <= target (tiny / odd middle dim): single step.
    return middle


def _choose_tm(M, target):
    """Row tile: multiple of 8, <= target, >=2 row tiles when M is big enough."""
    if M <= 8:
        return 8
    if M <= target:
        if M >= 256:
            # Keep >= 2 row tiles so both v7x TensorCores get work.
            return max(128, _round_up(pl.cdiv(M, 2), 128))
        return _round_up(M, 8)
    return target


def _vmem_estimate(tm, tmid, d_model, wbuf):
    x_bytes = 2 * tm * d_model * 4          # f32 x tile, double buffered
    o_bytes = 2 * tm * d_model * 4          # f32 output/accumulator tile
    w1_bytes = wbuf * d_model * tmid * 2    # bf16 W1 chunk
    w2_bytes = wbuf * tmid * d_model * 2    # bf16 W2 chunk
    bias = 2 * (tmid + d_model) * 4
    return x_bytes + o_bytes + w1_bytes + w2_bytes + bias


def ffn_kernel(x_ref, w1_ref, b1_ref, w2_ref, b2_ref, o_ref):
    """One (row-tile i, middle-chunk k) step of fc2(relu(fc1(x) + b1)) + b2.

    o_ref (f32) doubles as the reduction accumulator: its BlockSpec returns the
    same block for every k, so it stays resident in VMEM across the k axis.
    """
    k = pl.program_id(1)

    @pl.when(k == 0)
    def _init():
        o_ref[...] = jnp.zeros_like(o_ref)

    # fc1 chunk on the MXU: bf16 operands, f32 accumulation.
    h = jnp.dot(x_ref[...].astype(jnp.bfloat16), w1_ref[...],
                preferred_element_type=jnp.float32)
    h = jnp.maximum(h + b1_ref[...], 0.0)
    # TODO(synk): nn.Dropout(0.1) is identity in eval mode; training-mode
    # stochastic dropout (pltpu.prng_seed / prng_random_bits) not implemented.

    # fc2 partial product over this middle chunk, accumulated into o_ref (f32).
    o_ref[...] += jnp.dot(h.astype(jnp.bfloat16), w2_ref[...],
                          preferred_element_type=jnp.float32)

    @pl.when(k == pl.num_programs(1) - 1)
    def _finalize():
        o_ref[...] += b2_ref[...]


def feed_forward(x, w1, b1, w2, b2, *, tm=None, tmid=None):
    """x: (batch, seq, d_model).  Weights stored (in_features, out_features),
    ideally pre-cast to bf16 (see prepare_params).  out = relu(x@W1+b1)@W2+b2.
    """
    batch, seq, d_model = x.shape
    middle = w1.shape[1]
    M = batch * seq

    capacity = _vmem_capacity_bytes()
    budget = int(0.85 * capacity)
    big_vmem = capacity >= 100 * 2**20          # v5e / v6e (128 MiB); not v7x
    wbuf = 3 if big_vmem else 2                 # extra weight-chunk buffering

    if tmid is None:
        tmid = 1024 if big_vmem else 512
    tmid = _choose_tmid(middle, tmid)

    if tm is None:
        tm = 768 if big_vmem else 512
    tm = _choose_tm(M, tm)

    # Shrink the row tile / weight buffering until everything fits VMEM.
    while _vmem_estimate(tm, tmid, d_model, wbuf) > budget and tm > 128:
        tm = max(128, tm - 128)
    if _vmem_estimate(tm, tmid, d_model, wbuf) > budget and wbuf > 2:
        wbuf = 2

    est = _vmem_estimate(tm, tmid, d_model, wbuf)
    vmem_limit = int(min(budget, max(32 * 2**20, 2 * est)))

    x2d = x.reshape(M, d_model)                 # metadata-only reshape, f32
    # Cast weights only if the caller did not pre-cast (prepare_params).
    w1_bf = w1 if w1.dtype == jnp.bfloat16 else w1.astype(jnp.bfloat16)
    w2_bf = w2 if w2.dtype == jnp.bfloat16 else w2.astype(jnp.bfloat16)
    b1_f = b1.reshape(1, middle).astype(jnp.float32)
    b2_f = b2.reshape(1, d_model).astype(jnp.float32)

    grid = (pl.cdiv(M, tm), middle // tmid)

    w_kwargs = dict(pipeline_mode=pl.Buffered(wbuf)) if wbuf > 2 else {}
    w1_spec = pl.BlockSpec((d_model, tmid), lambda i, k: (0, k), **w_kwargs)
    w2_spec = pl.BlockSpec((tmid, d_model), lambda i, k: (k, 0), **w_kwargs)

    out2d = pl.pallas_call(
        ffn_kernel,
        out_shape=jax.ShapeDtypeStruct((M, d_model), jnp.float32),
        grid_spec=pltpu.PrefetchScalarGridSpec(
            num_scalar_prefetch=0,
            grid=grid,
            in_specs=[
                pl.BlockSpec((tm, d_model), lambda i, k: (i, 0)),   # x tile (f32)
                w1_spec,                                            # W1 chunk
                pl.BlockSpec((1, tmid), lambda i, k: (0, k)),       # b1 chunk
                w2_spec,                                            # W2 chunk
                pl.BlockSpec((1, d_model), lambda i, k: (0, 0)),    # b2
            ],
            out_specs=pl.BlockSpec((tm, d_model), lambda i, k: (i, 0)),
        ),
        compiler_params=pltpu.CompilerParams(
            dimension_semantics=("parallel", "arbitrary"),
            vmem_limit_bytes=vmem_limit),
    )(x2d, w1_bf, b1_f, w2_bf, b2_f)

    return out2d.reshape(batch, seq, d_model).astype(x.dtype)


def prepare_params(w1, b1, w2, b2):
    """One-time cast of the weight matrices to bf16 (hoisted out of the per-call
    wrapper so each forward does not re-read/re-write the weights in f32)."""
    return (w1.astype(jnp.bfloat16), b1.astype(jnp.float32),
            w2.astype(jnp.bfloat16), b2.astype(jnp.float32))


def init_params(key, d_model, middle_dim, dtype=jnp.float32):
    """Deterministic nn.Linear-style init: U(-1/sqrt(fan_in), 1/sqrt(fan_in))."""
    k1, k2, k3, k4 = jax.random.split(key, 4)
    bound1 = 1.0 / (d_model ** 0.5)
    bound2 = 1.0 / (middle_dim ** 0.5)
    # stored as (in_features, out_features)
    w1 = jax.random.uniform(k1, (d_model, middle_dim), dtype, -bound1, bound1)
    b1 = jax.random.uniform(k2, (1, middle_dim), dtype, -bound1, bound1)
    w2 = jax.random.uniform(k3, (middle_dim, d_model), dtype, -bound2, bound2)
    b2 = jax.random.uniform(k4, (1, d_model), dtype, -bound2, bound2)
    return w1, b1, w2, b2


if __name__ == "__main__":
    # Small shapes consistent with the module (d_model / middle scaled down).
    batch, seq = 2, 16
    d_model, middle_dim = 256, 512

    key = jax.random.PRNGKey(0)
    kx, kp = jax.random.split(key)
    x = jax.random.normal(kx, (batch, seq, d_model), dtype=jnp.float32)
    w1, b1, w2, b2 = init_params(kp, d_model, middle_dim)

    # One-time bf16 weight cast (hoisted out of the per-call wrapper).
    w1_bf, b1_f, w2_bf, b2_f = prepare_params(w1, b1, w2, b2)

    # tmid=256 exercises the middle-dimension reduction/accumulator path (2 steps).
    out = feed_forward(x, w1_bf, b1_f, w2_bf, b2_f, tmid=256)
    out = jax.block_until_ready(out)

    # Pure-JAX f32 reference (eval-mode dropout = identity); tolerance relaxed
    # for bf16 MXU operands with f32 accumulation.
    ref = jnp.maximum(x.reshape(-1, d_model) @ w1 + b1, 0.0) @ w2 + b2
    ref = ref.reshape(batch, seq, d_model)
    assert out.shape == (batch, seq, d_model)
    assert jnp.allclose(out, ref, atol=5e-2, rtol=5e-2), \
        float(jnp.max(jnp.abs(out - ref)))

    print("KERNEL_OK")
</pallas_src>

<mosaic_0001>
module attributes {stable_mosaic.version = 11 : i64} {
  func.func @ffn_kernel(%arg0: i32, %arg1: i32, %arg2: memref<32x256xf32, #tpu.memory_space<vmem>>, %arg3: memref<256x256xbf16, #tpu.memory_space<vmem>>, %arg4: memref<1x256xf32, #tpu.memory_space<vmem>>, %arg5: memref<256x256xbf16, #tpu.memory_space<vmem>>, %arg6: memref<1x256xf32, #tpu.memory_space<vmem>>, %arg7: memref<32x256xf32, #tpu.memory_space<vmem>>) attributes {dimension_semantics = [#tpu.dimension_semantics<parallel>, #tpu.dimension_semantics<arbitrary>], iteration_bounds = array<i64: 1, 2>, scalar_prefetch = 0 : i64, scratch_operands = 0 : i64, tpu.core_type = #tpu.core_type<tc>, window_params = [{transform_indices = @transform_0, window_bounds = array<i64: 32, 256>}, {transform_indices = @transform_1, window_bounds = array<i64: 256, 256>}, {transform_indices = @transform_2, window_bounds = array<i64: 1, 256>}, {transform_indices = @transform_3, window_bounds = array<i64: 256, 256>}, {pipeline_mode = #tpu.pipeline_mode<synchronous>, transform_indices = @transform_4, window_bounds = array<i64: 1, 256>}, {transform_indices = @transform_5, window_bounds = array<i64: 32, 256>}]} {
    %c0_i32 = arith.constant 0 : i32
    %0 = arith.cmpi eq, %arg1, %c0_i32 : i32
    %1 = arith.extui %0 : i1 to i32
    %c0_i32_0 = arith.constant 0 : i32
    %2 = arith.cmpi ne, %1, %c0_i32_0 : i32
    scf.if %2 {
      %cst_15 = arith.constant 0.000000e+00 : f32
      %21 = vector.broadcast %cst_15 : f32 to vector<32x256xf32>
      %c0_16 = arith.constant 0 : index
      %c0_17 = arith.constant 0 : index
      %22 = vector.load %arg7[%c0_16, %c0_17] : memref<32x256xf32, #tpu.memory_space<vmem>>, vector<32x256xf32>
      tpu.vector_store %arg7[%c0_16, %c0_17], %21 {strides = array<i32>} : memref<32x256xf32, #tpu.memory_space<vmem>>, vector<32x256xf32>,
    } else {
    }
    %c0 = arith.constant 0 : index
    %c0_1 = arith.constant 0 : index
    %3 = vector.load %arg2[%c0, %c0_1] : memref<32x256xf32, #tpu.memory_space<vmem>>, vector<32x256xf32>
    %4 = arith.truncf %3 : vector<32x256xf32> to vector<32x256xbf16>
    %c0_2 = arith.constant 0 : index
    %c0_3 = arith.constant 0 : index
    %5 = vector.load %arg3[%c0_2, %c0_3] : memref<256x256xbf16, #tpu.memory_space<vmem>>, vector<256x256xbf16>
    %cst = arith.constant dense<0.000000e+00> : vector<32x256xf32>
    %6 = tpu.matmul %4, %5, %cst {dimension_numbers = #tpu.dot_dimension_numbers<[1], [0], [0], [1], [0, 0, 1, 1], [], []>} : vector<32x256xbf16>, vector<256x256xbf16>, vector<32x256xf32> -> vector<32x256xf32>
    %c0_4 = arith.constant 0 : index
    %c0_5 = arith.constant 0 : index
    %7 = vector.load %arg4[%c0_4, %c0_5] : memref<1x256xf32, #tpu.memory_space<vmem>>, vector<1x256xf32>
    %8 = vector.broadcast %7 : vector<1x256xf32> to vector<32x256xf32>
    %9 = arith.addf %6, %8 : vector<32x256xf32>
    %cst_6 = arith.constant 0.000000e+00 : f32
    %10 = vector.broadcast %cst_6 : f32 to vector<32x256xf32>
    %11 = arith.maximumf %9, %10 : vector<32x256xf32>
    %c0_7 = arith.constant 0 : index
    %c0_8 = arith.constant 0 : index
    %12 = vector.load %arg7[%c0_7, %c0_8] : memref<32x256xf32, #tpu.memory_space<vmem>>, vector<32x256xf32>
    %13 = arith.truncf %11 : vector<32x256xf32> to vector<32x256xbf16>
    %c0_9 = arith.constant 0 : index
    %c0_10 = arith.constant 0 : index
    %14 = vector.load %arg5[%c0_9, %c0_10] : memref<256x256xbf16, #tpu.memory_space<vmem>>, vector<256x256xbf16>
    %cst_11 = arith.constant dense<0.000000e+00> : vector<32x256xf32>
    %15 = tpu.matmul %13, %14, %cst_11 {dimension_numbers = #tpu.dot_dimension_numbers<[1], [0], [0], [1], [0, 0, 1, 1], [], []>} : vector<32x256xbf16>, vector<256x256xbf16>, vector<32x256xf32> -> vector<32x256xf32>
    %16 = arith.addf %12, %15 : vector<32x256xf32>
    %c0_12 = arith.constant 0 : index
    %c0_13 = arith.constant 0 : index
    %17 = vector.load %arg7[%c0_12, %c0_13] : memref<32x256xf32, #tpu.memory_space<vmem>>, vector<32x256xf32>
    tpu.vector_store %arg7[%c0_12, %c0_13], %16 {strides = array<i32>} : memref<32x256xf32, #tpu.memory_space<vmem>>, vector<32x256xf32>,
    %c1_i32 = arith.constant 1 : i32
    %18 = arith.cmpi eq, %arg1, %c1_i32 : i32
    %19 = arith.extui %18 : i1 to i32
    %c0_i32_14 = arith.constant 0 : i32
    %20 = arith.cmpi ne, %19, %c0_i32_14 : i32
    scf.if %20 {
      %c0_15 = arith.constant 0 : index
      %c0_16 = arith.constant 0 : index
      %21 = vector.load %arg7[%c0_15, %c0_16] : memref<32x256xf32, #tpu.memory_space<vmem>>, vector<32x256xf32>
      %c0_17 = arith.constant 0 : index
      %c0_18 = arith.constant 0 : index
      %22 = vector.load %arg6[%c0_17, %c0_18] : memref<1x256xf32, #tpu.memory_space<vmem>>, vector<1x256xf32>
      %23 = vector.broadcast %22 : vector<1x256xf32> to vector<32x256xf32>
      %24 = arith.addf %21, %23 : vector<32x256xf32>
      %c0_19 = arith.constant 0 : index
      %c0_20 = arith.constant 0 : index
      %25 = vector.load %arg7[%c0_19, %c0_20] : memref<32x256xf32, #tpu.memory_space<vmem>>, vector<32x256xf32>
      tpu.vector_store %arg7[%c0_19, %c0_20], %24 {strides = array<i32>} : memref<32x256xf32, #tpu.memory_space<vmem>>, vector<32x256xf32>,
    } else {
    }
    return
  }
  func.func @transform_0(%arg0: i32, %arg1: i32) -> (i32, i32) {
    %c0_i32 = arith.constant 0 : i32
    %c0_i32_0 = arith.constant 0 : i32
    return %arg0, %c0_i32 : i32, i32
  }
  func.func @transform_1(%arg0: i32, %arg1: i32) -> (i32, i32) {
    %c0_i32 = arith.constant 0 : i32
    %c0_i32_0 = arith.constant 0 : i32
    return %c0_i32, %arg1 : i32, i32
  }
  func.func @transform_2(%arg0: i32, %arg1: i32) -> (i32, i32) {
    %c0_i32 = arith.constant 0 : i32
    %c0_i32_0 = arith.constant 0 : i32
    return %c0_i32, %arg1 : i32, i32
  }
  func.func @transform_3(%arg0: i32, %arg1: i32) -> (i32, i32) {
    %c0_i32 = arith.constant 0 : i32
    %c0_i32_0 = arith.constant 0 : i32
    return %arg1, %c0_i32 : i32, i32
  }
  func.func @transform_4(%arg0: i32, %arg1: i32) -> (i32, i32) {
    %c0_i32 = arith.constant 0 : i32
    %c0_i32_0 = arith.constant 0 : i32
    %c0_i32_1 = arith.constant 0 : i32
    return %c0_i32, %c0_i32_0 : i32, i32
  }
  func.func @transform_5(%arg0: i32, %arg1: i32) -> (i32, i32) {
    %c0_i32 = arith.constant 0 : i32
    %c0_i32_0 = arith.constant 0 : i32
    return %arg0, %c0_i32 : i32, i32
  }
}

</mosaic_0001>

<bundles_post_ra>
// kernel: tpu_custom_call.1
= control target key start
LH: loop header
LB: loop body
LE: loop exit
PB: predicated region body
PF: predicated region fallthrough
CT: control target
= control target key end

     0   :  { %s2113_s0 = inlined_call_operand.hbm [shape: f32[32,256], index: 0, kind: input, shape index: {}]   ;;  %s2114_s1 = inlined_call_operand.hbm [shape: bf16[256,512], index: 1, kind: input, shape index: {}]   ;;  %s2115_s2 = inlined_call_operand.hbm [shape: f32[1,512], index: 2, kind: input, shape index: {}]   ;;  %s2116_s3 = inlined_call_operand.hbm [shape: bf16[512,256], index: 3, kind: input, shape index: {}]   ;;  %s2117_s4 = inlined_call_operand.vmem [shape: f32[1,256], index: 4, kind: input, shape index: {}]   ;;  %s2118_s5 = inlined_call_operand.hbm [shape: f32[32,256], index: 5, kind: output, shape index: {}]  }
   0x1   :  { %2125 = sst [smem:[#allocation19_spill]] %s2113_s0 }
   0x2   :  { %2126 = sst [smem:[#allocation20_spill]] %s2114_s1 }
   0x3   :  { %10 = vsyncpa [#allocation3], 0 }
   0x4   :  { %11 = vsyncpa [#allocation6], 0 }
   0x5   :  { %13 = vsyncpa [#allocation6 + $0x1], 0 }
   0x6   :  { %14 = vsyncpa [#allocation9], 0 }
   0x7   :  { %16 = vsyncpa [#allocation9 + $0x1], 0 }
   0x8   :  { %17 = vsyncpa [#allocation4], 0  ;;  %s1817_s18 = smov 0   ;;  %s1819_s19 = smov 0  }
   0x9   :  { %s1821_s20 = smov 0   ;;  %s1823_s21 = smov 0  }
   0xa   :  { %s1825_s22 = smov 0   ;;  %s1827_s23 = smov 0  }
   0xb LB: > { %2127 = sst [smem:[#allocation15_spill]] %s1764_s20  ;;  %s32_s24 = sadd.s32 1, %s1772_s22  ;;  %s1776_s23 = sphi %s1827_s23, %s23_s23   ;;  %s1772_s22 = sphi %s1825_s22, %s2147_s22   ;;  %s1768_s21 = sphi %s1823_s21, %s2146_s21   ;;  %s1764_s20 = sphi %s1821_s20, %s2142_s20   ;;  %s1760_s19 = sphi %s1819_s19, %s2145_s19   ;;  %s1756_s18 = sphi %s1817_s18, %s2144_s18  }
   0xc   : > { %2128 = sst [smem:[#allocation16_spill]] %s1776_s23  ;;  %s68_s25 = sadd.s32 1, %s1764_s20 }
   0xd   : > { %p33_p0 = scmp.ge.s32.totalorder %s32_s24, 2  ;;  %p75_p1 = scmp.ne.s32.totalorder %s1764_s20, %s1760_s19 }
   0xe   : > { %p76_p2 = scmp.eq.s32.totalorder %s1776_s23, 0  ;;  %p1505_p4 = scmp.lt.s32.totalorder %s1776_s23, 2 }
   0xf   : > { %s2149_s24 = smov (%p33_p0, %s32_s24), 0  ;;  %s225_s28 = sand.u32 1, %s1776_s23  }
  0x10   : > { %2129 = sst [smem:[#allocation17_spill]] %s2149_s24  ;;  %p1854_p3 = por %p76_p2, %p75_p1 }
  0x11   : > { %s65_s27 = ssub.s32 %s1772_s22, %s2149_s24  ;;  %s1863_s29 = sand.u32 1, %s1764_s20  }
  0x12   : > { %p66_p5 = scmp.eq.s32.totalorder %s65_s27, 0  ;;  %s2121_s6 = sshll.u32 %s1863_s29, 8 }
  0x13   : > { %s1409_s7 = sshll.u32 %s1772_s22, 3  ;;  %s2132_s1 = sld [smem:[#allocation20_spill]] }
  0x14   : > { %s1866_s30 = scalar_select %p66_p5, %s1764_s20, %s68_s25  }
  0x15   : > { %s229_s12 = scalar_lea.vmem [#allocation5], %s2121_s6  ;;  %p1879_p6 = pnand %p1505_p4, %p1854_p3 }
  0x16   : > { %2131 = sst [smem:[#allocation18_spill]] %s1866_s30  ;;  %s237_s13 = sshll.u32 %s229_s12, 4  ;;  %s238_s13 = int_to_ptr.vmem [resolvable:$true] %s237_s13 }
  0x17   : > { %s1883_s15 = scalar_lea.sflag [#allocation6], %s225_s28  ;;  %s1778_s16 = smov 256  }
  0x18   : > { %s2119_s17 = smov 128   ;;  %s2120_s25 = smov 8  }
  0x19   : > { %s234_s10 = scalar_lea.hbm %s2132_s1, %s1409_s7  ;;  %s1891_s27 = sadd.s32 4294967295, %s1776_s23  }
  0x1a   : > { %s235_s11 = sshll.u32 %s234_s10, 4  ;;  %p81_p7 = scmp.ne.s32.totalorder %s1760_s19, %s1756_s18  ;;  %s236_s11 = int_to_ptr.hbm [resolvable:$true] %s235_s11 }
  0x1b   : > { %1497 = dma.hbm_to_vmem [thread:$0]  (!%p1879_p6), %s236_s11, 4096, %s238_s13, %s1883_s15, %s1778_s16, %s2119_s17, %s2120_s25  }
  0x1c   : > { %p82_p8 = scmp.eq.s32.totalorder %s1891_s27, 0  ;;  %p1130_p9 = scmp.ge.s32.totalorder %s1776_s23, 1 }
  0x1d   : > { %p191_p10 = scmp.lt.s32.totalorder %s1776_s23, 3  ;;  %s2135_s0 = sld [smem:[#allocation19_spill]] }
  0x1e   : > { %p1900_p11 = por %p82_p8, %p81_p7  ;;  %s1781_s18 = smov [#allocation2]  }
  0x1f   : > { %p1907_p12 = pnand %p1130_p9, %p191_p10  ;;  %s208_s10 = sshll.u32 %s1781_s18, 4  ;;  %s209_s10 = int_to_ptr.vmem [resolvable:$true] %s208_s10 }
  0x20   : > { %s1136_s11 = sshll.u32 %s1863_s29, 1  ;;  %s1137_s12 = sshll.u32 %s1772_s22, 1 }
  0x21   : > { %p1490_p13 = pneg %p1907_p12  ;;  %s251_s13 = scalar_lea.vmem [#allocation7], %s1136_s11 }
  0x22   : > { %s259_s28 = sshll.u32 %s251_s13, 4  ;;  %s255_s25 = scalar_lea.hbm %s2115_s2, %s1137_s12  ;;  %s260_s28 = int_to_ptr.vmem [resolvable:$true] %s259_s28 }
  0x23   : > { %s206_s8 = sshll.u32 %s2135_s0, 4  ;;  %p1491_p0 = pnand %p1490_p13, %p82_p8  ;;  %s207_s8 = int_to_ptr.hbm [resolvable:$true] %s206_s8 }
  0x24   : > { %s1782_s6 = smov 16   ;;  %s257_s0 = sshll.u32 %s255_s25, 4  ;;  %s258_s0 = int_to_ptr.hbm [resolvable:$true] %s257_s0 }
  0x25   : > { %1493 = dma.hbm_to_vmem [thread:$0]  (!%p1491_p0), %s207_s8, 1024, %s209_s10, [#allocation3], %s1778_s16, %s1778_s16, %s1782_s6  }
  0x26   : > { %1500 = dma.hbm_to_vmem [thread:$0]  (!%p1879_p6), %s258_s0, 32, %s260_s28, %s1883_s15  }
  0x27   : > { %s1411_s18 = sshll.u32 %s1772_s22, 8  ;;  %s2137_s11 = sshll.u32 %s1863_s29, 8 }
  0x28   : > { %s276_s30 = scalar_lea.hbm %s2116_s3, %s1411_s18  ;;  %s270_s20 = scalar_lea.vmem [#allocation8], %s2137_s11 }
  0x29   : > { %s279_s13 = sshll.u32 %s270_s20, 4  ;;  %s277_s23 = sshll.u32 %s276_s30, 4  ;;  %s280_s13 = int_to_ptr.vmem [resolvable:$true] %s279_s13  ;;  %s278_s23 = int_to_ptr.hbm [resolvable:$true] %s277_s23 }
  0x2a   : > { %s267_s17 = scalar_lea.sflag [#allocation9], %s1863_s29  ;;  %s2138_s12 = smov 8  }
  0x2b   : > { %s2139_s6 = smov 128   ;;  %291 = sbr.rel (%p1907_p12) target bundleno = 437 (0x1b5), region = 40 }
  0x2c   : > { %1503 = dma.hbm_to_vmem [thread:$0]  (!%p1879_p6), %s278_s23, 4096, %s280_s13, %s267_s17, %s2139_s6, %s2139_s6, %s2138_s12  }
  0x30   : > { %1739 = dma.done.wait (%p82_p8), [#allocation3], 1024  }
  0x31   : > { %1741 = vsyncadd (%p82_p8), [#allocation3], 4294966272  ;;  %s298_s0 = sand.u32 1, %s1891_s27   ;;  %s300_s1 = sand.u32 1, %s1760_s19  }
  0x32   : > { %s1144_s20 = sshll.u32 %s300_s1, 8  ;;  %s299_s24 = scalar_lea.sflag [#allocation6], %s298_s0 }
  0x33   : > { %s1943_s29 = scalar_lea.vmem [#allocation5], %s1144_s20 }
  0x34   : > { %1743 = dma.done.wait (%p1900_p11), %s299_s24, 4128  }
  0x35   : > { %1745 = vsyncadd (%p1900_p11), %s299_s24, 4294963168  ;;  %s1145_s23 = sshll.u32 %s300_s1, 1  ;;  %s319_s14 = scalar_lea.sflag [#allocation9], %s300_s1 }
  0x36   : > { %s1949_s30 = scalar_lea.vmem [#allocation7], %s1145_s23  ;;  %s1951_s15 = scalar_lea.vmem [#allocation8], %s1144_s20 }
  0x37   : > { %1747 = dma.done.wait (%p1900_p11), %s319_s14, 4096  }
  0x38   : > { %1749 = vsyncadd (%p1900_p11), %s319_s14, 4294963200  ;;  %p1147_p1 = scmp.ne.s32.totalorder %s1768_s21, 0 }
  0x3a   : > { %363 = sbr.rel (%p1147_p1) target bundleno = 72 (0x48), region = 60 }
  0x3f   : > { %v1783_v0 = vmov 0.0  }
  0x40   : > { %364 = vst [vmem:[#allocation10] sm:$0xff] %v1783_v0 }
  0x41   : > { %365 = vst [vmem:[#allocation10 + $0x8] sm:$0xff] %v1783_v0 }
  0x42   : > { %366 = vst [vmem:[#allocation10 + $0x10] sm:$0xff] %v1783_v0 }
  0x43   : > { %367 = vst [vmem:[#allocation10 + $0x18] sm:$0xff] %v1783_v0 }
  0x44   : > { %368 = vst [vmem:[#allocation10 + $0x20] sm:$0xff] %v1783_v0 }
  0x45   : > { %369 = vst [vmem:[#allocation10 + $0x28] sm:$0xff] %v1783_v0 }
  0x46   : > { %370 = vst [vmem:[#allocation10 + $0x30] sm:$0xff] %v1783_v0 }
  0x47   : > { %371 = vst [vmem:[#allocation10 + $0x38] sm:$0xff] %v1783_v0 }
  0x48 PF: > { %v1206_v1 = vld [vmem:[%s1943_s29 + $0x70] sm:$0xf]  ;;  %v1427_v2 = vld [vmem:[%s1943_s29 + $0x74] sm:$0xf0]  ;;  %v1426_v6 = vld [vmem:[%s1943_s29 + $0x74] sm:$0xf] }
  0x49   : > { %v1270_v3 = vld [vmem:[%s1943_s29 + $0xf0] sm:$0xf]  ;;  %v1207_v4 = vor.u32 %v1427_v2, %v1206_v1  ;;  %v1443_v5 = vld [vmem:[%s1943_s29 + $0xf4] sm:$0xf0]  ;;  %v1208_v7 = vld [vmem:[%s1943_s29 + $0x78] sm:$0xf0] }
  0x4a   : > { %v1271_v8 = vor.u32 %v1443_v5, %v1270_v3  ;;  %v1211_v9 = vor.u32 %v1426_v6, %v1208_v7  ;;  %v1442_v10 = vld [vmem:[%s1943_s29 + $0xf4] sm:$0xf]  ;;  %v1272_v11 = vld [vmem:[%s1943_s29 + $0xf8] sm:$0xf0]  ;;  %v1198_v12 = vld [vmem:[%s1943_s29 + $0x60] sm:$0xf] }
  0x4b   : > { %582 = vmatpush.bf16.msra.mxu0 %v1207_v4  ;;  %v1275_v13 = vor.u32 %v1442_v10, %v1272_v11  ;;  %v1425_v14 = vld [vmem:[%s1943_s29 + $0x64] sm:$0xf0]  ;;  %v1262_v15 = vld [vmem:[%s1943_s29 + $0xe0] sm:$0xf]  ;;  %v1424_v19 = vld [vmem:[%s1943_s29 + $0x64] sm:$0xf] }
  0x4c   : > { %v1441_v16 = vld [vmem:[%s1943_s29 + $0xe4] sm:$0xf0]  ;;  %601 = vmatpush.bf16.msra.mxu1 %v1271_v8  ;;  %620 = vmatpush.bf16.msra.mxu2 %v1211_v9  ;;  %v1199_v17 = vor.u32 %v1425_v14, %v1198_v12  ;;  %v1200_v20 = vld [vmem:[%s1943_s29 + $0x68] sm:$0xf0]  ;;  %v1440_v21 = vld [vmem:[%s1943_s29 + $0xe4] sm:$0xf] }
  0x4d   : > { %v1263_v18 = vor.u32 %v1441_v16, %v1262_v15  ;;  %639 = vmatpush.bf16.msra.mxu3 %v1275_v13  ;;  %v1203_v22 = vor.u32 %v1424_v19, %v1200_v20  ;;  %v1264_v23 = vld [vmem:[%s1943_s29 + $0xe8] sm:$0xf0]  ;;  %v1190_v24 = vld [vmem:[%s1943_s29 + $0x50] sm:$0xf]  ;;  %v1423_v25 = vld [vmem:[%s1943_s29 + $0x54] sm:$0xf0] }
  0x4e   : > { %v1267_v26 = vor.u32 %v1440_v21, %v1264_v23  ;;  %v1254_v27 = vld [vmem:[%s1943_s29 + $0xd0] sm:$0xf]  ;;  %v1439_v28 = vld [vmem:[%s1943_s29 + $0xd4] sm:$0xf0]  ;;  %v1422_v29 = vld [vmem:[%s1943_s29 + $0x54] sm:$0xf]  ;;  %v1191_v30 = vor.u32 %v1423_v25, %v1190_v24 }
  0x4f   : > { %583 = vmatpush.bf16.msra.mxu0 %v1199_v17  ;;  %v1192_v31 = vld [vmem:[%s1943_s29 + $0x58] sm:$0xf0]  ;;  %v1438_v32 = vld [vmem:[%s1943_s29 + $0xd4] sm:$0xf]  ;;  %v1255_v34 = vor.u32 %v1439_v28, %v1254_v27  ;;  %v1182_v36 = vld [vmem:[%s1943_s29 + $0x40] sm:$0xf] }
  0x50   : > { %v1256_v33 = vld [vmem:[%s1943_s29 + $0xd8] sm:$0xf0]  ;;  %602 = vmatpush.bf16.msra.mxu1 %v1263_v18  ;;  %621 = vmatpush.bf16.msra.mxu2 %v1203_v22  ;;  %v1195_v35 = vor.u32 %v1422_v29, %v1192_v31  ;;  %v1421_v37 = vld [vmem:[%s1943_s29 + $0x44] sm:$0xf0]  ;;  %v1246_v38 = vld [vmem:[%s1943_s29 + $0xc0] sm:$0xf] }
  0x51   : > { %640 = vmatpush.bf16.msra.mxu3 %v1267_v26  ;;  %v1259_v39 = vor.u32 %v1438_v32, %v1256_v33  ;;  %v1437_v40 = vld [vmem:[%s1943_s29 + $0xc4] sm:$0xf0]  ;;  %v1420_v41 = vld [vmem:[%s1943_s29 + $0x44] sm:$0xf]  ;;  %v1184_v42 = vld [vmem:[%s1943_s29 + $0x48] sm:$0xf0]  ;;  %v1183_v45 = vor.u32 %v1421_v37, %v1182_v36 }
  0x52   : > { %v1436_v43 = vld [vmem:[%s1943_s29 + $0xc4] sm:$0xf]  ;;  %v1248_v44 = vld [vmem:[%s1943_s29 + $0xc8] sm:$0xf0]  ;;  %v1247_v46 = vor.u32 %v1437_v40, %v1246_v38  ;;  %v1187_v47 = vor.u32 %v1420_v41, %v1184_v42  ;;  %v1174_v48 = vld [vmem:[%s1943_s29 + $0x30] sm:$0xf] }
  0x53   : > { %584 = vmatpush.bf16.msra.mxu0 %v1191_v30  ;;  %v1419_v49 = vld [vmem:[%s1943_s29 + $0x34] sm:$0xf0]  ;;  %v1238_v50 = vld [vmem:[%s1943_s29 + $0xb0] sm:$0xf]  ;;  %v1251_v51 = vor.u32 %v1436_v43, %v1248_v44  ;;  %v1418_v53 = vld [vmem:[%s1943_s29 + $0x34] sm:$0xf] }
  0x54   : > { %603 = vmatpush.bf16.msra.mxu1 %v1255_v34  ;;  %622 = vmatpush.bf16.msra.mxu2 %v1195_v35  ;;  %v1435_v52 = vld [vmem:[%s1943_s29 + $0xb4] sm:$0xf0]  ;;  %v1176_v54 = vld [vmem:[%s1943_s29 + $0x38] sm:$0xf0]  ;;  %v1434_v55 = vld [vmem:[%s1943_s29 + $0xb4] sm:$0xf]  ;;  %v1175_v57 = vor.u32 %v1419_v49, %v1174_v48 }
  0x55   : > { %641 = vmatpush.bf16.msra.mxu3 %v1259_v39  ;;  %v1240_v56 = vld [vmem:[%s1943_s29 + $0xb8] sm:$0xf0]  ;;  %v1239_v58 = vor.u32 %v1435_v52, %v1238_v50  ;;  %v1179_v59 = vor.u32 %v1418_v53, %v1176_v54  ;;  %v1166_v60 = vld [vmem:[%s1943_s29 + $0x20] sm:$0xf]  ;;  %v1417_v61 = vld [vmem:[%s1943_s29 + $0x24] sm:$0xf0] }
  0x56   : > { %v1230_v62 = vld [vmem:[%s1943_s29 + $0xa0] sm:$0xf]  ;;  %v1243_v63 = vor.u32 %v1434_v55, %v1240_v56  ;;  %v1433_v0 = vld [vmem:[%s1943_s29 + $0xa4] sm:$0xf0]  ;;  %v1416_v1 = vld [vmem:[%s1943_s29 + $0x24] sm:$0xf]  ;;  %v1167_v5 = vor.u32 %v1417_v61, %v1166_v60 }
  0x57   : > { %585 = vmatpush.bf16.msra.mxu0 %v1183_v45  ;;  %v1168_v2 = vld [vmem:[%s1943_s29 + $0x28] sm:$0xf0]  ;;  %v1432_v3 = vld [vmem:[%s1943_s29 + $0xa4] sm:$0xf]  ;;  %v1231_v6 = vor.u32 %v1433_v0, %v1230_v62  ;;  %v1158_v8 = vld [vmem:[%s1943_s29 + $0x10] sm:$0xf] }
  0x58   : > { %604 = vmatpush.bf16.msra.mxu1 %v1247_v46  ;;  %623 = vmatpush.bf16.msra.mxu2 %v1187_v47  ;;  %v1232_v4 = vld [vmem:[%s1943_s29 + $0xa8] sm:$0xf0]  ;;  %v1171_v7 = vor.u32 %v1416_v1, %v1168_v2  ;;  %v1415_v9 = vld [vmem:[%s1943_s29 + $0x14] sm:$0xf0]  ;;  %v1222_v10 = vld [vmem:[%s1943_s29 + $0x90] sm:$0xf] }
  0x59   : > { %642 = vmatpush.bf16.msra.mxu3 %v1251_v51  ;;  %v1235_v11 = vor.u32 %v1432_v3, %v1232_v4  ;;  %v1431_v12 = vld [vmem:[%s1943_s29 + $0x94] sm:$0xf0]  ;;  %v1414_v13 = vld [vmem:[%s1943_s29 + $0x14] sm:$0xf]  ;;  %v1160_v14 = vld [vmem:[%s1943_s29 + $0x18] sm:$0xf0]  ;;  %v1159_v17 = vor.u32 %v1415_v9, %v1158_v8 }
  0x5a   : > { %v1430_v15 = vld [vmem:[%s1943_s29 + $0x94] sm:$0xf]  ;;  %v1224_v16 = vld [vmem:[%s1943_s29 + $0x98] sm:$0xf0]  ;;  %v1150_v18 = vld [vmem:[%s1943_s29] sm:$0xf]  ;;  %v1223_v20 = vor.u32 %v1431_v12, %v1222_v10  ;;  %v1163_v21 = vor.u32 %v1414_v13, %v1160_v14 }
  0x5b   : > { %586 = vmatpush.bf16.msra.mxu0 %v1175_v57  ;;  %v1413_v19 = vld [vmem:[%s1943_s29 + $0x4] sm:$0xf0]  ;;  %v1214_v22 = vld [vmem:[%s1943_s29 + $0x80] sm:$0xf]  ;;  %v1412_v24 = vld [vmem:[%s1943_s29 + $0x4] sm:$0xf]  ;;  %v1227_v25 = vor.u32 %v1430_v15, %v1224_v16 }
  0x5c   : > { %605 = vmatpush.bf16.msra.mxu1 %v1239_v58  ;;  %624 = vmatpush.bf16.msra.mxu2 %v1179_v59  ;;  %v1429_v23 = vld [vmem:[%s1943_s29 + $0x84] sm:$0xf0]  ;;  %v1152_v26 = vld [vmem:[%s1943_s29 + $0x8] sm:$0xf0]  ;;  %v1428_v27 = vld [vmem:[%s1943_s29 + $0x84] sm:$0xf]  ;;  %v1151_v32 = vor.u32 %v1413_v19, %v1150_v18 }
  0x5d   : > { %643 = vmatpush.bf16.msra.mxu3 %v1243_v63  ;;  %v1216_v28 = vld [vmem:[%s1943_s29 + $0x88] sm:$0xf0]  ;;  %v372_v29 = vld [vmem:[#allocation2] sm:$0xff]  ;;  %v1334_v30 = vld [vmem:[%s1951_s15 + $0x70] sm:$0xf]  ;;  %v1215_v36 = vor.u32 %v1429_v23, %v1214_v22  ;;  %v1155_v37 = vor.u32 %v1412_v24, %v1152_v26  ;;  %p1404_p2 = scmp.ne.s32.totalorder %s1768_s21, 1 }
  0x5e   : > { %v1459_v31 = vld [vmem:[%s1951_s15 + $0x74] sm:$0xf0]  ;;  %v374_v33 = vld [vmem:[#allocation2 + $0x10] sm:$0xff]  ;;  %v1458_v34 = vld [vmem:[%s1951_s15 + $0x74] sm:$0xf]  ;;  %v1219_v40 = vor.u32 %v1428_v27, %v1216_v28 }
  0x5f   : > { %587 = vmatpush.bf16.msra.mxu0 %v1167_v5  ;;  %v1336_v35 = vld [vmem:[%s1951_s15 + $0x78] sm:$0xf0]  ;;  %v373_v38 = vld [vmem:[#allocation2 + $0x8] sm:$0xff]  ;;  %v375_v39 = vld [vmem:[#allocation2 + $0x18] sm:$0xff]  ;;  %v1335_v41 = vor.u32 %v1459_v31, %v1334_v30  ;;  %v380_v45 = vpack.c.bf16 %v374_v33, %v372_v29 }
  0x60   : > { %606 = vmatpush.bf16.msra.mxu1 %v1231_v6  ;;  %625 = vmatpush.bf16.msra.mxu2 %v1171_v7  ;;  %v1326_v42 = vld [vmem:[%s1951_s15 + $0x60] sm:$0xf]  ;;  %v1398_v43 = vld [vmem:[%s1951_s15 + $0xf0] sm:$0xf]  ;;  %v1475_v44 = vld [vmem:[%s1951_s15 + $0xf4] sm:$0xf0]  ;;  %v1339_v46 = vor.u32 %v1458_v34, %v1336_v35  ;;  %v381_v50 = vpack.c.bf16 %v375_v39, %v373_v38 }
  0x61   : > { %644 = vmatpush.bf16.msra.mxu3 %v1235_v11  ;;  %v1457_v47 = vld [vmem:[%s1951_s15 + $0x64] sm:$0xf0]  ;;  %v1474_v48 = vld [vmem:[%s1951_s15 + $0xf4] sm:$0xf]  ;;  %v1400_v49 = vld [vmem:[%s1951_s15 + $0xf8] sm:$0xf0]  ;;  %v1399_v53 = vor.u32 %v1475_v44, %v1398_v43 }
  0x62   : > { %v1456_v51 = vld [vmem:[%s1951_s15 + $0x64] sm:$0xf]  ;;  %v1328_v52 = vld [vmem:[%s1951_s15 + $0x68] sm:$0xf0]  ;;  %v1327_v54 = vor.u32 %v1457_v47, %v1326_v42  ;;  %v1403_v55 = vor.u32 %v1474_v48, %v1400_v49  ;;  %v1318_v56 = vld [vmem:[%s1951_s15 + $0x50] sm:$0xf] }
  0x63   : > { %588 = vmatpush.bf16.msra.mxu0 %v1159_v17  ;;  %v1390_v57 = vld [vmem:[%s1951_s15 + $0xe0] sm:$0xf]  ;;  %v1473_v58 = vld [vmem:[%s1951_s15 + $0xe4] sm:$0xf0]  ;;  %v1331_v59 = vor.u32 %v1456_v51, %v1328_v52  ;;  %v1455_v60 = vld [vmem:[%s1951_s15 + $0x54] sm:$0xf0] }
  0x64   : > { %607 = vmatpush.bf16.msra.mxu1 %v1223_v20  ;;  %626 = vmatpush.bf16.msra.mxu2 %v1163_v21  ;;  %v1472_v61 = vld [vmem:[%s1951_s15 + $0xe4] sm:$0xf]  ;;  %v1392_v62 = vld [vmem:[%s1951_s15 + $0xe8] sm:$0xf0]  ;;  %v1454_v63 = vld [vmem:[%s1951_s15 + $0x54] sm:$0xf]  ;;  %v1391_v1 = vor.u32 %v1473_v58, %v1390_v57  ;;  %v1319_v2 = vor.u32 %v1455_v60, %v1318_v56 }
  0x65   : > { %645 = vmatpush.bf16.msra.mxu3 %v1227_v25  ;;  %v1320_v0 = vld [vmem:[%s1951_s15 + $0x58] sm:$0xf0]  ;;  %v1395_v3 = vor.u32 %v1472_v61, %v1392_v62  ;;  %v1310_v4 = vld [vmem:[%s1951_s15 + $0x40] sm:$0xf]  ;;  %v1453_v6 = vld [vmem:[%s1951_s15 + $0x44] sm:$0xf0] }
  0x66   : > { %v1323_v5 = vor.u32 %v1454_v63, %v1320_v0  ;;  %v1470_v7 = vld [vmem:[%s1951_s15 + $0xd4] sm:$0xf]  ;;  %v1384_v8 = vld [vmem:[%s1951_s15 + $0xd8] sm:$0xf0]  ;;  %v1452_v9 = vld [vmem:[%s1951_s15 + $0x44] sm:$0xf]  ;;  %v1311_v11 = vor.u32 %v1453_v6, %v1310_v4 }
  0x67   : > { %589 = vmatpush.bf16.msra.mxu0 %v1151_v32  ;;  %v1312_v10 = vld [vmem:[%s1951_s15 + $0x48] sm:$0xf0]  ;;  %v1387_v12 = vor.u32 %v1470_v7, %v1384_v8  ;;  %v376_v14 = vld [vmem:[#allocation2 + $0x20] sm:$0xff]  ;;  %v377_v16 = vld [vmem:[#allocation2 + $0x28] sm:$0xff] }
  0x68   : > { %608 = vmatpush.bf16.msra.mxu1 %v1215_v36  ;;  %627 = vmatpush.bf16.msra.mxu2 %v1155_v37  ;;  %v1315_v13 = vor.u32 %v1452_v9, %v1312_v10  ;;  %v378_v15 = vld [vmem:[#allocation2 + $0x30] sm:$0xff]  ;;  %v379_v17 = vld [vmem:[#allocation2 + $0x38] sm:$0xff]  ;;  %v1304_v27 = vld [vmem:[%s1951_s15 + $0x38] sm:$0xf0] }
  0x69   : > { %646 = vmatpush.bf16.msra.mxu3 %v1219_v40  ;;  %v382_v18 = vpack.c.bf16 %v378_v15, %v376_v14  ;;  %v383_v19 = vpack.c.bf16 %v379_v17, %v377_v16  ;;  %v1382_v20 = vld [vmem:[%s1951_s15 + $0xd0] sm:$0xf]  ;;  %v1471_v21 = vld [vmem:[%s1951_s15 + $0xd4] sm:$0xf0]  ;;  %v1450_v25 = vld [vmem:[%s1951_s15 + $0x34] sm:$0xf] }
  0x6a   : > { %590 = vmatmul.bf16.vlgmr.msra.gmra.mxu0 %v380_v45  ;;  %v1383_v22 = vor.u32 %v1471_v21, %v1382_v20  ;;  %v1302_v23 = vld [vmem:[%s1951_s15 + $0x30] sm:$0xf]  ;;  %v1451_v24 = vld [vmem:[%s1951_s15 + $0x34] sm:$0xf0]  ;;  %v1307_v28 = vor.u32 %v1450_v25, %v1304_v27  ;;  %v1468_v29 = vld [vmem:[%s1951_s15 + $0xc4] sm:$0xf] }
  0x6b   : > { %870 = vmatpush.bf16.msrb.mxu0 %v1335_v41  ;;  %609 = vmatmul.bf16.vlgmr.msra.gmra.mxu1 %v381_v50  ;;  %v1303_v26 = vor.u32 %v1451_v24, %v1302_v23  ;;  %v1376_v30 = vld [vmem:[%s1951_s15 + $0xc8] sm:$0xf0]  ;;  %v1374_v31 = vld [vmem:[%s1951_s15 + $0xc0] sm:$0xf]  ;;  %v1469_v33 = vld [vmem:[%s1951_s15 + $0xc4] sm:$0xf0] }
  0x6c   : > { %908 = vmatpush.bf16.msrb.mxu2 %v1339_v46  ;;  %647 = vmatmul.bf16.vlgmr.msra.gmra.mxu3 %v381_v50  ;;  %v1379_v32 = vor.u32 %v1468_v29, %v1376_v30  ;;  %v1375_v34 = vor.u32 %v1469_v33, %v1374_v31  ;;  %v1294_v35 = vld [vmem:[%s1951_s15 + $0x20] sm:$0xf]  ;;  %v1449_v36 = vld [vmem:[%s1951_s15 + $0x24] sm:$0xf0]  ;;  %v1448_v38 = vld [vmem:[%s1951_s15 + $0x24] sm:$0xf] }
  0x6d   : > { %628 = vmatmul.bf16.vlgmr.msra.gmra.mxu2 %v380_v45  ;;  %889 = vmatpush.bf16.msrb.mxu1 %v1399_v53  ;;  %v1295_v37 = vor.u32 %v1449_v36, %v1294_v35  ;;  %v1296_v39 = vld [vmem:[%s1951_s15 + $0x28] sm:$0xf0]  ;;  %v1466_v41 = vld [vmem:[%s1951_s15 + $0xb4] sm:$0xf]  ;;  %v1368_v42 = vld [vmem:[%s1951_s15 + $0xb8] sm:$0xf0] }
  0x6e   : > { %927 = vmatpush.bf16.msrb.mxu3 %v1403_v55  ;;  %v1299_v40 = vor.u32 %v1448_v38, %v1296_v39  ;;  %v1366_v43 = vld [vmem:[%s1951_s15 + $0xb0] sm:$0xf]  ;;  %v1371_v44 = vor.u32 %v1466_v41, %v1368_v42  ;;  %v1467_v45 = vld [vmem:[%s1951_s15 + $0xb4] sm:$0xf0]  ;;  %v1446_v49 = vld [vmem:[%s1951_s15 + $0x14] sm:$0xf] }
  0x6f   : > { %871 = vmatpush.bf16.msrb.mxu0 %v1327_v54  ;;  %v1367_v46 = vor.u32 %v1467_v45, %v1366_v43  ;;  %v1286_v47 = vld [vmem:[%s1951_s15 + $0x10] sm:$0xf]  ;;  %v1447_v48 = vld [vmem:[%s1951_s15 + $0x14] sm:$0xf0]  ;;  %v1288_v51 = vld [vmem:[%s1951_s15 + $0x18] sm:$0xf0] }
  0x70   : > { %909 = vmatpush.bf16.msrb.mxu2 %v1331_v59  ;;  %v1287_v50 = vor.u32 %v1447_v48, %v1286_v47  ;;  %v1291_v52 = vor.u32 %v1446_v49, %v1288_v51  ;;  %v1464_v53 = vld [vmem:[%s1951_s15 + $0xa4] sm:$0xf]  ;;  %v1360_v54 = vld [vmem:[%s1951_s15 + $0xa8] sm:$0xf0]  ;;  %v1358_v55 = vld [vmem:[%s1951_s15 + $0xa0] sm:$0xf] }
  0x71   : > { %890 = vmatpush.bf16.msrb.mxu1 %v1391_v1  ;;  %v1363_v56 = vor.u32 %v1464_v53, %v1360_v54  ;;  %v1465_v57 = vld [vmem:[%s1951_s15 + $0xa4] sm:$0xf0]  ;;  %v1278_v59 = vld [vmem:[%s1951_s15] sm:$0xf]  ;;  %v1444_v61 = vld [vmem:[%s1951_s15 + $0x4] sm:$0xf] }
  0x72   : > { %928 = vmatpush.bf16.msrb.mxu3 %v1395_v3  ;;  %v1359_v58 = vor.u32 %v1465_v57, %v1358_v55  ;;  %v1445_v60 = vld [vmem:[%s1951_s15 + $0x4] sm:$0xf0]  ;;  %v1280_v63 = vld [vmem:[%s1951_s15 + $0x8] sm:$0xf0]  ;;  %v1462_v1 = vld [vmem:[%s1951_s15 + $0x94] sm:$0xf] }
  0x73   : > { %872 = vmatpush.bf16.msrb.mxu0 %v1319_v2  ;;  %v1279_v62 = vor.u32 %v1445_v60, %v1278_v59  ;;  %v1283_v0 = vor.u32 %v1444_v61, %v1280_v63  ;;  %v1352_v2 = vld [vmem:[%s1951_s15 + $0x98] sm:$0xf0]  ;;  %v1350_v3 = vld [vmem:[%s1951_s15 + $0x90] sm:$0xf]  ;;  %v1460_v7 = vld [vmem:[%s1951_s15 + $0x84] sm:$0xf] }
  0x74   : > { %910 = vmatpush.bf16.msrb.mxu2 %v1323_v5  ;;  %v1355_v4 = vor.u32 %v1462_v1, %v1352_v2  ;;  %v1463_v5 = vld [vmem:[%s1951_s15 + $0x94] sm:$0xf0]  ;;  %v1344_v8 = vld [vmem:[%s1951_s15 + $0x88] sm:$0xf0]  ;;  %v1342_v9 = vld [vmem:[%s1951_s15 + $0x80] sm:$0xf] }
  0x75   : > { %891 = vmatpush.bf16.msrb.mxu1 %v1383_v22  ;;  %v1351_v6 = vor.u32 %v1463_v5, %v1350_v3  ;;  %v1347_v10 = vor.u32 %v1460_v7, %v1344_v8  ;;  %v666_v61 = vld [vmem:[#allocation10] sm:$0xff]  ;;  %v667_v3 = vld [vmem:[#allocation10 + $0x8] sm:$0xff] }
  0x76   : > { %929 = vmatpush.bf16.msrb.mxu3 %v1387_v12 }
  0x77   : > { %873 = vmatpush.bf16.msrb.mxu0 %v1311_v11  ;;  %v1461_v11 = vld [vmem:[%s1951_s15 + $0x84] sm:$0xf0] }
  0x78   : > { %911 = vmatpush.bf16.msrb.mxu2 %v1315_v13  ;;  %v1343_v12 = vor.u32 %v1461_v11, %v1342_v9  ;;  %v416_v13 = vld [vmem:[%s1949_s30] sm:$0x3] }
  0x79   : > { %892 = vmatpush.bf16.msrb.mxu1 %v1375_v34  ;;  %v418_v15 = vperm.slane %v416_v13, 0 }
  0x7a   : > { %595 = vmatmul.bf16.gmra.mxu0 %v382_v18  ;;  %930 = vmatpush.bf16.msrb.mxu3 %v1379_v32 }
  0x7b   : > { %614 = vmatmul.bf16.gmra.mxu1 %v383_v19  ;;  %874 = vmatpush.bf16.msrb.mxu0 %v1303_v26 }
  0x7c   : > { %652 = vmatmul.bf16.gmra.mxu3 %v383_v19  ;;  %912 = vmatpush.bf16.msrb.mxu2 %v1307_v28  ;;  %v419_v19 = vperm.slane %v416_v13, 1  ;;  %v669_v13 = vld [vmem:[#allocation10 + $0x18] sm:$0xff] }
  0x7d   : > { %633 = vmatmul.bf16.gmra.mxu2 %v382_v18  ;;  %893 = vmatpush.bf16.msrb.mxu1 %v1367_v46 }
  0x7e   : > { %931 = vmatpush.bf16.msrb.mxu3 %v1371_v44 }
  0x7f   : > { %875 = vmatpush.bf16.msrb.mxu0 %v1295_v37 }
  0x80   : > { %913 = vmatpush.bf16.msrb.mxu2 %v1299_v40 }
  0x81   : > { %894 = vmatpush.bf16.msrb.mxu1 %v1359_v58 }
  0x82   : > { %932 = vmatpush.bf16.msrb.mxu3 %v1363_v56 }
  0x83   : > { %876 = vmatpush.bf16.msrb.mxu0 %v1287_v50 }
  0x84   : > { %914 = vmatpush.bf16.msrb.mxu2 %v1291_v52 }
  0x85   : > { %895 = vmatpush.bf16.msrb.mxu1 %v1351_v6  ;;  %v668_v6 = vld [vmem:[#allocation10 + $0x10] sm:$0xff] }
  0x86   : > { %933 = vmatpush.bf16.msrb.mxu3 %v1355_v4 }
  0x87   : > { %877 = vmatpush.bf16.msrb.mxu0 %v1279_v62 }
  0x88   : > { %915 = vmatpush.bf16.msrb.mxu2 %v1283_v0 }
  0x89   : > { %896 = vmatpush.bf16.msrb.mxu1 %v1343_v12 }
  0x8a   : > { %934 = vmatpush.bf16.msrb.mxu3 %v1347_v10 }
  0xe7   : > { %v591_v14 = vpop.f32.mrf.mxu0 }
  0xe8   : > { %v610_v16 = vpop.f32.mrf.mxu1  ;;  %v592_v17 = vadd.f32 %v591_v14, %v418_v15 }
  0xea   : > { %v611_v22 = vadd.f32 %v610_v16, %v592_v17  ;;  %v670_v16 = vld [vmem:[#allocation10 + $0x20] sm:$0xff] }
  0xec   : > { %v658_v27 = vmax.f32 %v611_v22, 0.0  ;;  %v671_v22 = vld [vmem:[#allocation10 + $0x28] sm:$0xff] }
  0xef   : > { %v648_v20 = vpop.f32.mrf.mxu3  ;;  %v593_v21 = vpop.f32.mrf.mxu0 }
  0xf0   : > { %v629_v18 = vpop.f32.mrf.mxu2  ;;  %v594_v23 = vadd.f32 %v593_v21, %v418_v15  ;;  %v612_v24 = vpop.f32.mrf.mxu1 }
  0xf1   : > { %v630_v26 = vadd.f32 %v629_v18, %v419_v19 }
  0xf2   : > { %v613_v25 = vadd.f32 %v612_v24, %v594_v23 }
  0xf3   : > { %v649_v31 = vadd.f32 %v648_v20, %v630_v26  ;;  %v672_v26 = vld [vmem:[#allocation10 + $0x30] sm:$0xff] }
  0xf4   : > { %v660_v28 = vmax.f32 %v613_v25, 0.0 }
  0xf5   : > { %v659_v37 = vmax.f32 %v649_v31, 0.0 }
  0xf6   : > { %v674_v29 = vpack.c.bf16 %v660_v28, %v658_v27 }
  0xf7   : > { %v650_v33 = vpop.f32.mrf.mxu3  ;;  %v596_v34 = vpop.f32.mrf.mxu0 }
  0xf8   : > { %v631_v30 = vpop.f32.mrf.mxu2  ;;  %v615_v35 = vpop.f32.mrf.mxu1  ;;  %878 = vmatmul.bf16.vlgmr.msrb.gmra.mxu0 %v674_v29  ;;  %916 = vmatmul.bf16.vlgmr.msrb.gmra.mxu2 %v674_v29  ;;  %v597_v39 = vadd.f32 %v596_v34, %v418_v15 }
  0xf9   : > { %v632_v32 = vadd.f32 %v631_v30, %v419_v19 }
  0xfa   : > { %v616_v44 = vadd.f32 %v615_v35, %v597_v39 }
  0xfb   : > { %v651_v36 = vadd.f32 %v650_v33, %v632_v32  ;;  %v673_v32 = vld [vmem:[#allocation10 + $0x38] sm:$0xff] }
  0xfc   : > { %v662_v49 = vmax.f32 %v616_v44, 0.0 }
  0xfd   : > { %v661_v38 = vmax.f32 %v651_v36, 0.0 }
  0xff   : > { %v675_v40 = vpack.c.bf16 %v661_v38, %v659_v37  ;;  %v653_v42 = vpop.f32.mrf.mxu3  ;;  %v598_v43 = vpop.f32.mrf.mxu0 }
 0x100   : > { %v634_v41 = vpop.f32.mrf.mxu2  ;;  %v599_v45 = vadd.f32 %v598_v43, %v418_v15  ;;  %v617_v46 = vpop.f32.mrf.mxu1 }
 0x101   : > { %897 = vmatmul.bf16.vlgmr.msrb.gmra.mxu1 %v675_v40  ;;  %935 = vmatmul.bf16.vlgmr.msrb.gmra.mxu3 %v675_v40  ;;  %v635_v48 = vadd.f32 %v634_v41, %v419_v19 }
 0x102   : > { %v618_v47 = vadd.f32 %v617_v46, %v599_v45 }
 0x103   : > { %v654_v53 = vadd.f32 %v653_v42, %v635_v48 }
 0x104   : > { %v664_v50 = vmax.f32 %v618_v47, 0.0 }
 0x105   : > { %v663_v57 = vmax.f32 %v654_v53, 0.0 }
 0x106   : > { %v676_v52 = vpack.c.bf16 %v664_v50, %v662_v49 }
 0x107   : > { %v655_v55 = vpop.f32.mrf.mxu3 }
 0x108   : > { %v636_v51 = vpop.f32.mrf.mxu2  ;;  %883 = vmatmul.bf16.gmra.mxu0 %v676_v52  ;;  %921 = vmatmul.bf16.gmra.mxu2 %v676_v52 }
 0x109   : > { %v637_v54 = vadd.f32 %v636_v51, %v419_v19 }
 0x10b   : > { %v656_v56 = vadd.f32 %v655_v55, %v637_v54 }
 0x10d   : > { %v665_v58 = vmax.f32 %v656_v56, 0.0 }
 0x10f   : > { %v677_v59 = vpack.c.bf16 %v665_v58, %v663_v57 }
 0x111   : > { %902 = vmatmul.bf16.gmra.mxu1 %v677_v59  ;;  %940 = vmatmul.bf16.gmra.mxu3 %v677_v59 }
 0x175   : > { %v879_v60 = vpop.f32.mrf.mxu0 }
 0x17b   : > { %v917_v63 = vpop.f32.mrf.mxu2 }
 0x17d   : > { %v881_v2 = vpop.f32.mrf.mxu0 }
 0x17e   : > { %v898_v62 = vpop.f32.mrf.mxu1 }
 0x17f   : > { %v899_v0 = vadd.f32 %v898_v62, %v879_v60 }
 0x181   : > { %v946_v1 = vadd.f32 %v899_v0, %v666_v61 }
 0x183   : > { %954 = vst [vmem:[#allocation10] sm:$0xff] %v946_v1  ;;  %v919_v10 = vpop.f32.mrf.mxu2 }
 0x184   : > { %v936_v4 = vpop.f32.mrf.mxu3 }
 0x185   : > { %v937_v5 = vadd.f32 %v936_v4, %v917_v63  ;;  %v884_v12 = vpop.f32.mrf.mxu0 }
 0x186   : > { %v900_v7 = vpop.f32.mrf.mxu1 }
 0x187   : > { %v947_v8 = vadd.f32 %v937_v5, %v667_v3  ;;  %v901_v9 = vadd.f32 %v900_v7, %v881_v2 }
 0x189   : > { %955 = vst [vmem:[#allocation10 + $0x8] sm:$0xff] %v947_v8  ;;  %v948_v11 = vadd.f32 %v901_v9, %v668_v6 }
 0x18b   : > { %956 = vst [vmem:[#allocation10 + $0x10] sm:$0xff] %v948_v11  ;;  %v922_v21 = vpop.f32.mrf.mxu2 }
 0x18c   : > { %v938_v14 = vpop.f32.mrf.mxu3 }
 0x18d   : > { %v939_v15 = vadd.f32 %v938_v14, %v919_v10  ;;  %v886_v25 = vpop.f32.mrf.mxu0 }
 0x18e   : > { %v903_v17 = vpop.f32.mrf.mxu1 }
 0x18f   : > { %v949_v18 = vadd.f32 %v939_v15, %v669_v13  ;;  %v904_v19 = vadd.f32 %v903_v17, %v884_v12 }
 0x191   : > { %957 = vst [vmem:[#allocation10 + $0x18] sm:$0xff] %v949_v18  ;;  %v950_v20 = vadd.f32 %v904_v19, %v670_v16 }
 0x193   : > { %958 = vst [vmem:[#allocation10 + $0x20] sm:$0xff] %v950_v20  ;;  %v924_v31 = vpop.f32.mrf.mxu2 }
 0x194   : > { %v941_v23 = vpop.f32.mrf.mxu3 }
 0x195   : > { %v942_v24 = vadd.f32 %v941_v23, %v922_v21 }
 0x196   : > { %v905_v27 = vpop.f32.mrf.mxu1 }
 0x197   : > { %v951_v28 = vadd.f32 %v942_v24, %v671_v22  ;;  %v906_v29 = vadd.f32 %v905_v27, %v886_v25 }
 0x199   : > { %959 = vst [vmem:[#allocation10 + $0x28] sm:$0xff] %v951_v28  ;;  %v952_v30 = vadd.f32 %v906_v29, %v672_v26 }
 0x19b   : > { %960 = vst [vmem:[#allocation10 + $0x30] sm:$0xff] %v952_v30 }
 0x19c   : > { %v943_v33 = vpop.f32.mrf.mxu3 }
 0x19d   : > { %v944_v34 = vadd.f32 %v943_v33, %v924_v31  ;;  %965 = sbr.rel (%p1404_p2) target bundleno = 431 (0x1af), region = 64 }
 0x19f   : > { %v953_v35 = vadd.f32 %v944_v34, %v673_v32 }
 0x1a1   : > { %961 = vst [vmem:[#allocation10 + $0x38] sm:$0xff] %v953_v35 }
 0x1a2   : > { %v966_v36 = vld [vmem:[#allocation10] sm:$0xff]  ;;  %v974_v37 = vld [vmem:[%s2117_s4] sm:$0x3]  ;;  %v967_v38 = vld [vmem:[#allocation10 + $0x8] sm:$0xff] }
 0x1a3   : > { %v976_v39 = vperm.slane %v974_v37, 0  ;;  %v977_v40 = vperm.slane %v974_v37, 1  ;;  %v968_v41 = vld [vmem:[#allocation10 + $0x10] sm:$0xff]  ;;  %v969_v42 = vld [vmem:[#allocation10 + $0x18] sm:$0xff]  ;;  %v970_v43 = vld [vmem:[#allocation10 + $0x20] sm:$0xff] }
 0x1a4   : > { %v971_v47 = vld [vmem:[#allocation10 + $0x28] sm:$0xff]  ;;  %v972_v49 = vld [vmem:[#allocation10 + $0x30] sm:$0xff] }
 0x1a5   : > { %v980_v44 = vadd.f32 %v976_v39, %v966_v36  ;;  %v981_v45 = vadd.f32 %v977_v40, %v967_v38  ;;  %v982_v46 = vadd.f32 %v976_v39, %v968_v41  ;;  %v983_v48 = vadd.f32 %v977_v40, %v969_v42 }
 0x1a6   : > { %v984_v50 = vadd.f32 %v976_v39, %v970_v43  ;;  %v985_v52 = vadd.f32 %v977_v40, %v971_v47  ;;  %v986_v53 = vadd.f32 %v976_v39, %v972_v49 }
 0x1a7   : > { %988 = vst [vmem:[#allocation10] sm:$0xff] %v980_v44 }
 0x1a8   : > { %v973_v51 = vld [vmem:[#allocation10 + $0x38] sm:$0xff]  ;;  %989 = vst [vmem:[#allocation10 + $0x8] sm:$0xff] %v981_v45 }
 0x1a9   : > { %990 = vst [vmem:[#allocation10 + $0x10] sm:$0xff] %v982_v46  ;;  %v987_v54 = vadd.f32 %v977_v40, %v973_v51 }
 0x1aa   : > { %991 = vst [vmem:[#allocation10 + $0x18] sm:$0xff] %v983_v48 }
 0x1ab   : > { %992 = vst [vmem:[#allocation10 + $0x20] sm:$0xff] %v984_v50 }
 0x1ac   : > { %993 = vst [vmem:[#allocation10 + $0x28] sm:$0xff] %v985_v52 }
 0x1ad   : > { %994 = vst [vmem:[#allocation10 + $0x30] sm:$0xff] %v986_v53 }
 0x1ae   : > { %995 = vst [vmem:[#allocation10 + $0x38] sm:$0xff] %v987_v54 }
 0x1af PF: > { %p1507_p3 = scmp.eq.s32.totalorder %s1891_s27, 1  ;;  %s1007_s8 = sshll.u32 %s2118_s5, 4  ;;  %s1008_s8 = int_to_ptr.hbm [resolvable:$true] %s1007_s8 }
 0x1b0   : > { %s1784_s9 = smov [#allocation10]   ;;  %s1785_s28 = smov 256  }
 0x1b1   : > { %s1005_s10 = sshll.u32 %s1784_s9, 4  ;;  %s1786_s7 = smov 16   ;;  %s1006_s10 = int_to_ptr.vmem [resolvable:$true] %s1005_s10 }
 0x1b2   : > { %1487 = dma.vmem_to_hbm [thread:$0]  (%p1507_p3), %s1006_s10, 1024, %s1008_s8, [#allocation4], %s1785_s28, %s1785_s28, %s1786_s7  }
 0x1b3   : > { %1751 = dma.done.wait (%p1507_p3), [#allocation4], 1024  }
 0x1b4   : > { %1753 = vsyncadd (%p1507_p3), [#allocation4], 4294966272 }
 0x1b5 PF: > { %s2140_s18 = sld [smem:[#allocation16_spill]]  ;;  %s2146_s21 = smov %s1772_s22 }
 0x1b6   : > { %s2141_s11 = sld [smem:[#allocation15_spill]] }
 0x1b7   : > { %s2142_s20 = sld [smem:[#allocation18_spill]] }
 0x1b8   : > { %s2143_s27 = sld [smem:[#allocation17_spill]] }
 0x1bb   : > { %s23_s23 = sadd.s32 1, %s2140_s18   ;;  %s2144_s18 = smov %s1760_s19 }
 0x1bc   : > { %p20_p4 = scmp.ge.s32.totalorder %s23_s23, 4   ;;  %s2145_s19 = smov %s2141_s11 }
 0x1be   : > { %s2147_s22 = smov %s2143_s27  ;;  %22 = sbr.rel (!%p20_p4) target bundleno = 11 (0xb), region = 116 }
 0x1c3   :  { %1024 = vsyncpa [#allocation3], 1 }
 0x1c4   :  { %1026 = vsyncpa [#allocation3 + $0x1], 1 }
 0x1c5   :  { %1027 = vsyncpa [#allocation6], 1 }
 0x1c6   :  { %1029 = vsyncpa [#allocation6 + $0x1], 1 }
 0x1c7   :  { %1030 = vsyncpa [#allocation9], 1 }
 0x1c8   :  { %1032 = vsyncpa [#allocation9 + $0x1], 1 }
 0x1c9   :  { %1033 = vsyncpa [#allocation4], 1 }
 0x1ca   :  { %1035 = vsyncpa [#allocation4 + $0x1], 1 }

</bundles_post_ra>
